<compile_context>
chip_gen: v7x
topology: tpu7x:2x2x1
jax: 0.10.0
libtpu: 0.0.40
codegen_flags: <defaults>
</compile_context>

<pallas_src>
import jax
import jax.numpy as jnp
from jax.experimental import pallas as pl
from jax.experimental.pallas import tpu as pltpu

_LANE = 128
_SUBLANE = 8


def _round_up(n, m):
    return ((n + m - 1) // m) * m


# ----------------------------------------------------------------------------- kernel
def market_vae_kernel(
    # per-grid-step activations
    x_ref, eps_ref,
    # encoder (BatchNorm folded into Linear)
    w1_ref, b1_ref,
    w2_ref, b2_ref,
    # fused [mu | log_var] head (each half padded to 128 lanes)
    wh_ref, bh_ref,
    # decoder (BatchNorm folded into Linear)
    wd1_ref, bd1_ref,
    wd2_ref, bd2_ref,
    # final reconstruction Linear (padded to 128-lane output)
    wo_ref, bo_ref,
    # outputs (lane-dense, padded)
    xrec_ref, mu_ref, lv_ref,
):
    bf16 = jnp.bfloat16
    f32 = jnp.float32
    lp = mu_ref.shape[-1]  # padded latent width (128-multiple)

    x = x_ref[...]  # bf16 [tile_m, IP]

    # ---- encoder ----
    h = jnp.dot(x, w1_ref[...], preferred_element_type=f32) + b1_ref[...]
    h = jnp.maximum(h, 0.0)                      # BN folded, Dropout = id (eval)
    h = jnp.dot(h.astype(bf16), w2_ref[...], preferred_element_type=f32) + b2_ref[...]
    h = jnp.maximum(h, 0.0)

    # ---- fused mu / log_var head (single MXU pass, 128-lane aligned halves) ----
    head = jnp.dot(h.astype(bf16), wh_ref[...], preferred_element_type=f32) + bh_ref[...]
    mu = head[:, :lp]
    lv = head[:, lp:]

    # ---- reparameterization: z = mu + eps * exp(0.5 * log_var) ----
    z = mu + eps_ref[...] * jnp.exp(0.5 * lv)

    # ---- decoder ----
    d = jnp.dot(z.astype(bf16), wd1_ref[...], preferred_element_type=f32) + bd1_ref[...]
    d = jnp.maximum(d, 0.0)
    d = jnp.dot(d.astype(bf16), wd2_ref[...], preferred_element_type=f32) + bd2_ref[...]
    d = jnp.maximum(d, 0.0)
    xrec = jnp.dot(d.astype(bf16), wo_ref[...], preferred_element_type=f32) + bo_ref[...]

    xrec_ref[...] = xrec
    mu_ref[...] = mu
    lv_ref[...] = lv


# ------------------------------------------------------------------- parameter setup
def init_raw_params(key, input_dim, latent_dim, hidden_dims):
    """Synthetic parameters with PyTorch-module shapes (W stored as [in, out])."""
    def linear(k, fan_in, fan_out):
        kw, kb = jax.random.split(k)
        bound = 1.0 / jnp.sqrt(fan_in)
        w = jax.random.uniform(kw, (fan_in, fan_out), jnp.float32, -bound, bound)
        b = jax.random.uniform(kb, (fan_out,), jnp.float32, -bound, bound)
        return w, b

    def bn(k, dim):
        kg, kb, km, kv = jax.random.split(k, 4)
        gamma = 1.0 + 0.05 * jax.random.normal(kg, (dim,), jnp.float32)
        beta = 0.05 * jax.random.normal(kb, (dim,), jnp.float32)
        mean = 0.05 * jax.random.normal(km, (dim,), jnp.float32)
        var = 1.0 + 0.05 * jax.random.uniform(kv, (dim,), jnp.float32)
        return gamma, beta, mean, var

    h1, h2 = hidden_dims
    ks = jax.random.split(key, 11)
    return dict(
        enc1=(*linear(ks[0], input_dim, h1), bn(ks[1], h1)),
        enc2=(*linear(ks[2], h1, h2), bn(ks[3], h2)),
        mu=linear(ks[4], h2, latent_dim),
        log_var=linear(ks[5], h2, latent_dim),
        dec1=(*linear(ks[6], latent_dim, h2), bn(ks[7], h2)),
        dec2=(*linear(ks[8], h2, h1), bn(ks[9], h1)),
        out=linear(ks[10], h1, input_dim),
    )


def prepare_kernel_params(raw, input_dim, latent_dim, hidden_dims, bn_eps=1e-5):
    """Fold BN into Linears, fuse mu/log_var, zero-pad to 128-lane multiples, cast bf16."""
    h1, h2 = hidden_dims
    ip = _round_up(input_dim, _LANE)
    lp = _round_up(latent_dim, _LANE)
    h1p = _round_up(h1, _LANE)
    h2p = _round_up(h2, _LANE)

    def fold(w, b, bn_p):
        gamma, beta, mean, var = bn_p
        scale = gamma * jax.lax.rsqrt(var + bn_eps)
        shift = beta - mean * scale
        return w * scale[None, :], b * scale + shift

    def pad2(a, rows, cols):
        return jnp.pad(a, ((0, rows - a.shape[0]), (0, cols - a.shape[1])))

    def pad_bias(b, cols):
        return jnp.pad(b, (0, cols - b.shape[0]))[None, :].astype(jnp.float32)

    w1, b1 = fold(*raw["enc1"])
    w2, b2 = fold(*raw["enc2"])
    wd1, bd1 = fold(*raw["dec1"])
    wd2, bd2 = fold(*raw["dec2"])
    wm, bm = raw["mu"]
    wv, bv = raw["log_var"]
    wo, bo = raw["out"]

    # fused [mu | log_var] head; each half gets its own 128-lane-aligned slab
    wh = jnp.zeros((h2p, 2 * lp), jnp.float32)
    wh = wh.at[:h2, :latent_dim].set(wm).at[:h2, lp:lp + latent_dim].set(wv)
    bh = jnp.zeros((2 * lp,), jnp.float32)
    bh = bh.at[:latent_dim].set(bm).at[lp:lp + latent_dim].set(bv)

    return (
        pad2(w1, ip, h1p).astype(jnp.bfloat16),   pad_bias(b1, h1p),
        pad2(w2, h1p, h2p).astype(jnp.bfloat16),  pad_bias(b2, h2p),
        wh.astype(jnp.bfloat16),                  bh[None, :].astype(jnp.float32),
        pad2(wd1, lp, h2p).astype(jnp.bfloat16),  pad_bias(bd1, h2p),
        pad2(wd2, h2p, h1p).astype(jnp.bfloat16), pad_bias(bd2, h1p),
        pad2(wo, h1p, ip).astype(jnp.bfloat16),   pad_bias(bo, ip),
    )


# -------------------------------------------------------------------------- wrapper
@jax.jit
def market_vae_forward(x, eps, kernel_params):
    batch, input_dim = x.shape
    latent_dim = eps.shape[1]
    ip = kernel_params[0].shape[0]            # padded input width
    lp = kernel_params[4].shape[1] // 2       # padded latent width

    # batch tiling: >=256 rows per grid step when the batch is large enough
    tile_m = 256 if batch >= 256 else _round_up(batch, _SUBLANE)
    b_pad = _round_up(batch, tile_m)

    xp = jnp.pad(x, ((0, b_pad - batch), (0, ip - input_dim))).astype(jnp.bfloat16)
    epsp = jnp.pad(eps, ((0, b_pad - batch), (0, lp - latent_dim))).astype(jnp.float32)

    grid = (b_pad // tile_m,)

    def row_spec(ncols):
        return pl.BlockSpec((tile_m, ncols), lambda i: (i, 0))

    def resident(shape):
        # constant block index -> weights loaded once, stay VMEM-resident
        return pl.BlockSpec(shape, lambda i: (0, 0))

    in_specs = [row_spec(ip), row_spec(lp)] + [resident(p.shape) for p in kernel_params]
    out_specs = (row_spec(ip), row_spec(lp), row_spec(lp))
    out_shapes = (
        jax.ShapeDtypeStruct((b_pad, ip), jnp.float32),   # x_reconstructed (padded)
        jax.ShapeDtypeStruct((b_pad, lp), jnp.float32),   # mu (padded)
        jax.ShapeDtypeStruct((b_pad, lp), jnp.float32),   # log_var (padded)
    )

    xrec_p, mu_p, lv_p = pl.pallas_call(
        market_vae_kernel,
        out_shape=out_shapes,
        grid=grid,
        in_specs=in_specs,
        out_specs=out_specs,
        compiler_params=pltpu.CompilerParams(
            dimension_semantics=("parallel",),
            vmem_limit_bytes=16 << 20,
        ),
    )(xp, epsp, *kernel_params)

    return (xrec_p[:batch, :input_dim],
            mu_p[:batch, :latent_dim],
            lv_p[:batch, :latent_dim])


# ------------------------------------------------------------------------ reference
def reference_forward(x, eps, raw, bn_eps=1e-5):
    """Pure-JAX f32 reference of the PyTorch forward (eval mode)."""
    def bn_apply(h, p):
        gamma, beta, mean, var = p
        return (h - mean) * jax.lax.rsqrt(var + bn_eps) * gamma + beta

    w1, b1, bn1 = raw["enc1"]
    w2, b2, bn2 = raw["enc2"]
    wm, bm = raw["mu"]
    wv, bv = raw["log_var"]
    wd1, bd1, bnd1 = raw["dec1"]
    wd2, bd2, bnd2 = raw["dec2"]
    wo, bo = raw["out"]

    h = jnp.maximum(bn_apply(x @ w1 + b1, bn1), 0.0)
    h = jnp.maximum(bn_apply(h @ w2 + b2, bn2), 0.0)
    mu = h @ wm + bm
    lv = h @ wv + bv
    z = mu + eps * jnp.exp(0.5 * lv)
    d = jnp.maximum(bn_apply(z @ wd1 + bd1, bnd1), 0.0)
    d = jnp.maximum(bn_apply(d @ wd2 + bd2, bnd2), 0.0)
    xrec = d @ wo + bo
    return xrec, mu, lv


if __name__ == "__main__":
    batch = 8
    input_dim = 32
    latent_dim = 16
    hidden_dims = [256, 128]   # module default

    key = jax.random.PRNGKey(0)
    kx, keps, kp = jax.random.split(key, 3)

    x = jax.random.normal(kx, (batch, input_dim), jnp.float32)
    eps = jax.random.normal(keps, (batch, latent_dim), jnp.float32)

    raw = init_raw_params(kp, input_dim, latent_dim, hidden_dims)
    kparams = prepare_kernel_params(raw, input_dim, latent_dim, hidden_dims)

    xrec, mu, lv = market_vae_forward(x, eps, kparams)
    jax.block_until_ready((xrec, mu, lv))

    xrec_r, mu_r, lv_r = reference_forward(x, eps, raw)
    assert xrec.shape == (batch, input_dim)
    assert mu.shape == (batch, latent_dim) and lv.shape == (batch, latent_dim)
    # bf16 weights/activations inside the kernel -> loosened tolerance vs f32 reference
    assert jnp.allclose(mu, mu_r, atol=5e-2, rtol=5e-2)
    assert jnp.allclose(lv, lv_r, atol=5e-2, rtol=5e-2)
    assert jnp.allclose(xrec, xrec_r, atol=5e-2, rtol=5e-2)

    print("KERNEL_OK")
</pallas_src>

<mosaic_0001>
module attributes {stable_mosaic.version = 11 : i64} {
  func.func @market_vae_kernel(%arg0: i32, %arg1: memref<8x128xbf16, #tpu.memory_space<vmem>>, %arg2: memref<8x128xf32, #tpu.memory_space<vmem>>, %arg3: memref<128x256xbf16, #tpu.memory_space<vmem>>, %arg4: memref<1x256xf32, #tpu.memory_space<vmem>>, %arg5: memref<256x128xbf16, #tpu.memory_space<vmem>>, %arg6: memref<1x128xf32, #tpu.memory_space<vmem>>, %arg7: memref<128x256xbf16, #tpu.memory_space<vmem>>, %arg8: memref<1x256xf32, #tpu.memory_space<vmem>>, %arg9: memref<128x128xbf16, #tpu.memory_space<vmem>>, %arg10: memref<1x128xf32, #tpu.memory_space<vmem>>, %arg11: memref<128x256xbf16, #tpu.memory_space<vmem>>, %arg12: memref<1x256xf32, #tpu.memory_space<vmem>>, %arg13: memref<256x128xbf16, #tpu.memory_space<vmem>>, %arg14: memref<1x128xf32, #tpu.memory_space<vmem>>, %arg15: memref<8x128xf32, #tpu.memory_space<vmem>>, %arg16: memref<8x128xf32, #tpu.memory_space<vmem>>, %arg17: memref<8x128xf32, #tpu.memory_space<vmem>>) attributes {dimension_semantics = [#tpu.dimension_semantics<parallel>], iteration_bounds = array<i64: 1>, scalar_prefetch = 0 : i64, scratch_operands = 0 : i64, tpu.core_type = #tpu.core_type<tc>, window_params = [{transform_indices = @transform_0, window_bounds = array<i64: 8, 128>}, {transform_indices = @transform_1, window_bounds = array<i64: 8, 128>}, {pipeline_mode = #tpu.pipeline_mode<synchronous>, transform_indices = @transform_2, window_bounds = array<i64: 128, 256>}, {pipeline_mode = #tpu.pipeline_mode<synchronous>, transform_indices = @transform_3, window_bounds = array<i64: 1, 256>}, {pipeline_mode = #tpu.pipeline_mode<synchronous>, transform_indices = @transform_4, window_bounds = array<i64: 256, 128>}, {pipeline_mode = #tpu.pipeline_mode<synchronous>, transform_indices = @transform_5, window_bounds = array<i64: 1, 128>}, {pipeline_mode = #tpu.pipeline_mode<synchronous>, transform_indices = @transform_6, window_bounds = array<i64: 128, 256>}, {pipeline_mode = #tpu.pipeline_mode<synchronous>, transform_indices = @transform_7, window_bounds = array<i64: 1, 256>}, {pipeline_mode = #tpu.pipeline_mode<synchronous>, transform_indices = @transform_8, window_bounds = array<i64: 128, 128>}, {pipeline_mode = #tpu.pipeline_mode<synchronous>, transform_indices = @transform_9, window_bounds = array<i64: 1, 128>}, {pipeline_mode = #tpu.pipeline_mode<synchronous>, transform_indices = @transform_10, window_bounds = array<i64: 128, 256>}, {pipeline_mode = #tpu.pipeline_mode<synchronous>, transform_indices = @transform_11, window_bounds = array<i64: 1, 256>}, {pipeline_mode = #tpu.pipeline_mode<synchronous>, transform_indices = @transform_12, window_bounds = array<i64: 256, 128>}, {pipeline_mode = #tpu.pipeline_mode<synchronous>, transform_indices = @transform_13, window_bounds = array<i64: 1, 128>}, {transform_indices = @transform_14, window_bounds = array<i64: 8, 128>}, {transform_indices = @transform_15, window_bounds = array<i64: 8, 128>}, {transform_indices = @transform_16, window_bounds = array<i64: 8, 128>}]} {
    %c0 = arith.constant 0 : index
    %c0_0 = arith.constant 0 : index
    %0 = vector.load %arg1[%c0, %c0_0] : memref<8x128xbf16, #tpu.memory_space<vmem>>, vector<8x128xbf16>
    %c0_1 = arith.constant 0 : index
    %c0_2 = arith.constant 0 : index
    %1 = vector.load %arg3[%c0_1, %c0_2] : memref<128x256xbf16, #tpu.memory_space<vmem>>, vector<128x256xbf16>
    %cst = arith.constant dense<0.000000e+00> : vector<8x256xf32>
    %2 = tpu.matmul %0, %1, %cst {dimension_numbers = #tpu.dot_dimension_numbers<[1], [0], [0], [1], [0, 0, 1, 1], [], []>} : vector<8x128xbf16>, vector<128x256xbf16>, vector<8x256xf32> -> vector<8x256xf32>
    %c0_3 = arith.constant 0 : index
    %c0_4 = arith.constant 0 : index
    %3 = vector.load %arg4[%c0_3, %c0_4] : memref<1x256xf32, #tpu.memory_space<vmem>>, vector<1x256xf32>
    %4 = vector.broadcast %3 : vector<1x256xf32> to vector<8x256xf32>
    %5 = arith.addf %2, %4 : vector<8x256xf32>
    %cst_5 = arith.constant 0.000000e+00 : f32
    %6 = vector.broadcast %cst_5 : f32 to vector<8x256xf32>
    %7 = arith.maximumf %5, %6 : vector<8x256xf32>
    %8 = arith.truncf %7 : vector<8x256xf32> to vector<8x256xbf16>
    %c0_6 = arith.constant 0 : index
    %c0_7 = arith.constant 0 : index
    %9 = vector.load %arg5[%c0_6, %c0_7] : memref<256x128xbf16, #tpu.memory_space<vmem>>, vector<256x128xbf16>
    %cst_8 = arith.constant dense<0.000000e+00> : vector<8x128xf32>
    %10 = tpu.matmul %8, %9, %cst_8 {dimension_numbers = #tpu.dot_dimension_numbers<[1], [0], [0], [1], [0, 0, 1, 1], [], []>} : vector<8x256xbf16>, vector<256x128xbf16>, vector<8x128xf32> -> vector<8x128xf32>
    %c0_9 = arith.constant 0 : index
    %c0_10 = arith.constant 0 : index
    %11 = vector.load %arg6[%c0_9, %c0_10] : memref<1x128xf32, #tpu.memory_space<vmem>>, vector<1x128xf32>
    %12 = vector.broadcast %11 : vector<1x128xf32> to vector<8x128xf32>
    %13 = arith.addf %10, %12 : vector<8x128xf32>
    %cst_11 = arith.constant 0.000000e+00 : f32
    %14 = vector.broadcast %cst_11 : f32 to vector<8x128xf32>
    %15 = arith.maximumf %13, %14 : vector<8x128xf32>
    %16 = arith.truncf %15 : vector<8x128xf32> to vector<8x128xbf16>
    %c0_12 = arith.constant 0 : index
    %c0_13 = arith.constant 0 : index
    %17 = vector.load %arg7[%c0_12, %c0_13] : memref<128x256xbf16, #tpu.memory_space<vmem>>, vector<128x256xbf16>
    %cst_14 = arith.constant dense<0.000000e+00> : vector<8x256xf32>
    %18 = tpu.matmul %16, %17, %cst_14 {dimension_numbers = #tpu.dot_dimension_numbers<[1], [0], [0], [1], [0, 0, 1, 1], [], []>} : vector<8x128xbf16>, vector<128x256xbf16>, vector<8x256xf32> -> vector<8x256xf32>
    %c0_15 = arith.constant 0 : index
    %c0_16 = arith.constant 0 : index
    %19 = vector.load %arg8[%c0_15, %c0_16] : memref<1x256xf32, #tpu.memory_space<vmem>>, vector<1x256xf32>
    %20 = vector.broadcast %19 : vector<1x256xf32> to vector<8x256xf32>
    %21 = arith.addf %18, %20 : vector<8x256xf32>
    %22 = vector.extract_strided_slice %21 {offsets = [0, 0], sizes = [8, 128], strides = [1, 1]} : vector<8x256xf32> to vector<8x128xf32>
    %23 = vector.extract_strided_slice %21 {offsets = [0, 128], sizes = [8, 128], strides = [1, 1]} : vector<8x256xf32> to vector<8x128xf32>
    %c0_17 = arith.constant 0 : index
    %c0_18 = arith.constant 0 : index
    %24 = vector.load %arg2[%c0_17, %c0_18] : memref<8x128xf32, #tpu.memory_space<vmem>>, vector<8x128xf32>
    %cst_19 = arith.constant 5.000000e-01 : f32
    %25 = vector.broadcast %cst_19 : f32 to vector<8x128xf32>
    %26 = arith.mulf %25, %23 : vector<8x128xf32>
    %27 = math.exp %26 : vector<8x128xf32>
    %28 = arith.mulf %24, %27 : vector<8x128xf32>
    %29 = arith.addf %22, %28 : vector<8x128xf32>
    %30 = arith.truncf %29 : vector<8x128xf32> to vector<8x128xbf16>
    %c0_20 = arith.constant 0 : index
    %c0_21 = arith.constant 0 : index
    %31 = vector.load %arg9[%c0_20, %c0_21] : memref<128x128xbf16, #tpu.memory_space<vmem>>, vector<128x128xbf16>
    %cst_22 = arith.constant dense<0.000000e+00> : vector<8x128xf32>
    %32 = tpu.matmul %30, %31, %cst_22 {dimension_numbers = #tpu.dot_dimension_numbers<[1], [0], [0], [1], [0, 0, 1, 1], [], []>} : vector<8x128xbf16>, vector<128x128xbf16>, vector<8x128xf32> -> vector<8x128xf32>
    %c0_23 = arith.constant 0 : index
    %c0_24 = arith.constant 0 : index
    %33 = vector.load %arg10[%c0_23, %c0_24] : memref<1x128xf32, #tpu.memory_space<vmem>>, vector<1x128xf32>
    %34 = vector.broadcast %33 : vector<1x128xf32> to vector<8x128xf32>
    %35 = arith.addf %32, %34 : vector<8x128xf32>
    %cst_25 = arith.constant 0.000000e+00 : f32
    %36 = vector.broadcast %cst_25 : f32 to vector<8x128xf32>
    %37 = arith.maximumf %35, %36 : vector<8x128xf32>
    %38 = arith.truncf %37 : vector<8x128xf32> to vector<8x128xbf16>
    %c0_26 = arith.constant 0 : index
    %c0_27 = arith.constant 0 : index
    %39 = vector.load %arg11[%c0_26, %c0_27] : memref<128x256xbf16, #tpu.memory_space<vmem>>, vector<128x256xbf16>
    %cst_28 = arith.constant dense<0.000000e+00> : vector<8x256xf32>
    %40 = tpu.matmul %38, %39, %cst_28 {dimension_numbers = #tpu.dot_dimension_numbers<[1], [0], [0], [1], [0, 0, 1, 1], [], []>} : vector<8x128xbf16>, vector<128x256xbf16>, vector<8x256xf32> -> vector<8x256xf32>
    %c0_29 = arith.constant 0 : index
    %c0_30 = arith.constant 0 : index
    %41 = vector.load %arg12[%c0_29, %c0_30] : memref<1x256xf32, #tpu.memory_space<vmem>>, vector<1x256xf32>
    %42 = vector.broadcast %41 : vector<1x256xf32> to vector<8x256xf32>
    %43 = arith.addf %40, %42 : vector<8x256xf32>
    %cst_31 = arith.constant 0.000000e+00 : f32
    %44 = vector.broadcast %cst_31 : f32 to vector<8x256xf32>
    %45 = arith.maximumf %43, %44 : vector<8x256xf32>
    %46 = arith.truncf %45 : vector<8x256xf32> to vector<8x256xbf16>
    %c0_32 = arith.constant 0 : index
    %c0_33 = arith.constant 0 : index
    %47 = vector.load %arg13[%c0_32, %c0_33] : memref<256x128xbf16, #tpu.memory_space<vmem>>, vector<256x128xbf16>
    %cst_34 = arith.constant dense<0.000000e+00> : vector<8x128xf32>
    %48 = tpu.matmul %46, %47, %cst_34 {dimension_numbers = #tpu.dot_dimension_numbers<[1], [0], [0], [1], [0, 0, 1, 1], [], []>} : vector<8x256xbf16>, vector<256x128xbf16>, vector<8x128xf32> -> vector<8x128xf32>
    %c0_35 = arith.constant 0 : index
    %c0_36 = arith.constant 0 : index
    %49 = vector.load %arg14[%c0_35, %c0_36] : memref<1x128xf32, #tpu.memory_space<vmem>>, vector<1x128xf32>
    %50 = vector.broadcast %49 : vector<1x128xf32> to vector<8x128xf32>
    %51 = arith.addf %48, %50 : vector<8x128xf32>
    %c0_37 = arith.constant 0 : index
    %c0_38 = arith.constant 0 : index
    %52 = vector.load %arg15[%c0_37, %c0_38] : memref<8x128xf32, #tpu.memory_space<vmem>>, vector<8x128xf32>
    tpu.vector_store %arg15[%c0_37, %c0_38], %51 {strides = array<i32>} : memref<8x128xf32, #tpu.memory_space<vmem>>, vector<8x128xf32>,
    %c0_39 = arith.constant 0 : index
    %c0_40 = arith.constant 0 : index
    %53 = vector.load %arg16[%c0_39, %c0_40] : memref<8x128xf32, #tpu.memory_space<vmem>>, vector<8x128xf32>
    tpu.vector_store %arg16[%c0_39, %c0_40], %22 {strides = array<i32>} : memref<8x128xf32, #tpu.memory_space<vmem>>, vector<8x128xf32>,
    %c0_41 = arith.constant 0 : index
    %c0_42 = arith.constant 0 : index
    %54 = vector.load %arg17[%c0_41, %c0_42] : memref<8x128xf32, #tpu.memory_space<vmem>>, vector<8x128xf32>
    tpu.vector_store %arg17[%c0_41, %c0_42], %23 {strides = array<i32>} : memref<8x128xf32, #tpu.memory_space<vmem>>, vector<8x128xf32>,
    return
  }
  func.func @transform_0(%arg0: i32) -> (i32, i32) {
    %c0_i32 = arith.constant 0 : i32
    %c0_i32_0 = arith.constant 0 : i32
    return %arg0, %c0_i32 : i32, i32
  }
  func.func @transform_1(%arg0: i32) -> (i32, i32) {
    %c0_i32 = arith.constant 0 : i32
    %c0_i32_0 = arith.constant 0 : i32
    return %arg0, %c0_i32 : i32, i32
  }
  func.func @transform_2(%arg0: i32) -> (i32, i32) {
    %c0_i32 = arith.constant 0 : i32
    %c0_i32_0 = arith.constant 0 : i32
    %c0_i32_1 = arith.constant 0 : i32
    return %c0_i32, %c0_i32_0 : i32, i32
  }
  func.func @transform_3(%arg0: i32) -> (i32, i32) {
    %c0_i32 = arith.constant 0 : i32
    %c0_i32_0 = arith.constant 0 : i32
    %c0_i32_1 = arith.constant 0 : i32
    return %c0_i32, %c0_i32_0 : i32, i32
  }
  func.func @transform_4(%arg0: i32) -> (i32, i32) {
    %c0_i32 = arith.constant 0 : i32
    %c0_i32_0 = arith.constant 0 : i32
    %c0_i32_1 = arith.constant 0 : i32
    return %c0_i32, %c0_i32_0 : i32, i32
  }
  func.func @transform_5(%arg0: i32) -> (i32, i32) {
    %c0_i32 = arith.constant 0 : i32
    %c0_i32_0 = arith.constant 0 : i32
    %c0_i32_1 = arith.constant 0 : i32
    return %c0_i32, %c0_i32_0 : i32, i32
  }
  func.func @transform_6(%arg0: i32) -> (i32, i32) {
    %c0_i32 = arith.constant 0 : i32
    %c0_i32_0 = arith.constant 0 : i32
    %c0_i32_1 = arith.constant 0 : i32
    return %c0_i32, %c0_i32_0 : i32, i32
  }
  func.func @transform_7(%arg0: i32) -> (i32, i32) {
    %c0_i32 = arith.constant 0 : i32
    %c0_i32_0 = arith.constant 0 : i32
    %c0_i32_1 = arith.constant 0 : i32
    return %c0_i32, %c0_i32_0 : i32, i32
  }
  func.func @transform_8(%arg0: i32) -> (i32, i32) {
    %c0_i32 = arith.constant 0 : i32
    %c0_i32_0 = arith.constant 0 : i32
    %c0_i32_1 = arith.constant 0 : i32
    return %c0_i32, %c0_i32_0 : i32, i32
  }
  func.func @transform_9(%arg0: i32) -> (i32, i32) {
    %c0_i32 = arith.constant 0 : i32
    %c0_i32_0 = arith.constant 0 : i32
    %c0_i32_1 = arith.constant 0 : i32
    return %c0_i32, %c0_i32_0 : i32, i32
  }
  func.func @transform_10(%arg0: i32) -> (i32, i32) {
    %c0_i32 = arith.constant 0 : i32
    %c0_i32_0 = arith.constant 0 : i32
    %c0_i32_1 = arith.constant 0 : i32
    return %c0_i32, %c0_i32_0 : i32, i32
  }
  func.func @transform_11(%arg0: i32) -> (i32, i32) {
    %c0_i32 = arith.constant 0 : i32
    %c0_i32_0 = arith.constant 0 : i32
    %c0_i32_1 = arith.constant 0 : i32
    return %c0_i32, %c0_i32_0 : i32, i32
  }
  func.func @transform_12(%arg0: i32) -> (i32, i32) {
    %c0_i32 = arith.constant 0 : i32
    %c0_i32_0 = arith.constant 0 : i32
    %c0_i32_1 = arith.constant 0 : i32
    return %c0_i32, %c0_i32_0 : i32, i32
  }
  func.func @transform_13(%arg0: i32) -> (i32, i32) {
    %c0_i32 = arith.constant 0 : i32
    %c0_i32_0 = arith.constant 0 : i32
    %c0_i32_1 = arith.constant 0 : i32
    return %c0_i32, %c0_i32_0 : i32, i32
  }
  func.func @transform_14(%arg0: i32) -> (i32, i32) {
    %c0_i32 = arith.constant 0 : i32
    %c0_i32_0 = arith.constant 0 : i32
    return %arg0, %c0_i32 : i32, i32
  }
  func.func @transform_15(%arg0: i32) -> (i32, i32) {
    %c0_i32 = arith.constant 0 : i32
    %c0_i32_0 = arith.constant 0 : i32
    return %arg0, %c0_i32 : i32, i32
  }
  func.func @transform_16(%arg0: i32) -> (i32, i32) {
    %c0_i32 = arith.constant 0 : i32
    %c0_i32_0 = arith.constant 0 : i32
    return %arg0, %c0_i32 : i32, i32
  }
}

</mosaic_0001>

<bundles_post_ra>
// kernel: market_vae_forward.1
= control target key start
LH: loop header
LB: loop body
LE: loop exit
PB: predicated region body
PF: predicated region fallthrough
CT: control target
= control target key end

     0   :  { %s1895_s0 = inlined_call_operand.vmem [shape: bf16[8,128], index: 0, kind: input, shape index: {}]   ;;  %s1896_s1 = inlined_call_operand.vmem [shape: f32[8,128], index: 1, kind: input, shape index: {}]   ;;  %s1897_s2 = inlined_call_operand.hbm [shape: bf16[128,256], index: 2, kind: input, shape index: {}]   ;;  %s1898_s3 = inlined_call_operand.vmem [shape: f32[1,256], index: 3, kind: input, shape index: {}]   ;;  %s1899_s4 = inlined_call_operand.hbm [shape: bf16[256,128], index: 4, kind: input, shape index: {}]   ;;  %s1900_s5 = inlined_call_operand.hbm [shape: f32[1,128], index: 5, kind: input, shape index: {}]   ;;  %s1901_s6 = inlined_call_operand.hbm [shape: bf16[128,256], index: 6, kind: input, shape index: {}]   ;;  %s1902_s7 = inlined_call_operand.vmem [shape: f32[1,256], index: 7, kind: input, shape index: {}]   ;;  %s1903_s8 = inlined_call_operand.vmem [shape: bf16[128,128], index: 8, kind: input, shape index: {}]   ;;  %s1904_s9 = inlined_call_operand.vmem [shape: f32[1,128], index: 9, kind: input, shape index: {}]   ;;  %s1905_s10 = inlined_call_operand.hbm [shape: bf16[128,256], index: 10, kind: input, shape index: {}]   ;;  %s1906_s11 = inlined_call_operand.vmem [shape: f32[1,256], index: 11, kind: input, shape index: {}]   ;;  %s1907_s12 = inlined_call_operand.hbm [shape: bf16[256,128], index: 12, kind: input, shape index: {}]   ;;  %s1908_s13 = inlined_call_operand.vmem [shape: f32[1,128], index: 13, kind: input, shape index: {}]   ;;  %s1909_s14 = inlined_call_operand.hbm [shape: f32[8,128], index: 14, kind: output, shape index: {0}]   ;;  %s1910_s15 = inlined_call_operand.hbm [shape: f32[8,128], index: 15, kind: output, shape index: {1}]   ;;  %s1911_s16 = inlined_call_operand.hbm [shape: f32[8,128], index: 16, kind: output, shape index: {2}]  }
   0x1   :  { %1913 = sst [smem:[#allocation23_spill]] %s1895_s0 }
   0x2   :  { %1914 = sst [smem:[#allocation24_spill]] %s1909_s14 }
   0x3   :  { %22 = vsyncpa [#allocation3], 0 }
   0x4   :  { %23 = vsyncpa [#allocation6], 0 }
   0x5   :  { %24 = vsyncpa [#allocation9], 0 }
   0x6   :  { %25 = vsyncpa [#allocation12], 0 }
   0x7   :  { %26 = vsyncpa [#allocation4], 0 }
   0x8   :  { %27 = vsyncpa [#allocation15], 0  ;;  %s1613_s21 = smov [#allocation5]   ;;  %s1403_s25 = scalar_lea.hbm %s1899_s4, 2048 }
   0x9   :  { %s51_s22 = sshll.u32 %s1613_s21, 4  ;;  %p1404_p0 = scmp.ne.s32.totalorder %s1899_s4, %s1403_s25  ;;  %s52_s22 = int_to_ptr.vmem [resolvable:$true] %s51_s22 }
   0xa   :  { %p1407_p1 = scmp.lt.u32.totalorder %s1403_s25, %s1899_s4 }
   0xc   :  { %p1409_p2 = pnand %p1407_p1, %p1404_p0 }
   0xe   :  { %1412 = shalt.err (!%p1409_p2)
}
   0xf   :  { %s1413_s30 = scalar_lea.vmem %s52_s22, 2048  ;;  %p1418_p4 = scmp.lt.s32.totalorder %s52_s22, %s52_s22 }
  0x10   :  { %p1414_p3 = scmp.ne.s32.totalorder %s52_s22, %s1413_s30  ;;  %p1419_p5 = scmp.lt.s32.totalorder %s1413_s30, %s1413_s30 }
  0x12   :  { %p1420_p6 = por %p1419_p5, %p1418_p4 }
  0x14   :  { %p1421_p7 = pnand %p1420_p6, %p1414_p3 }
  0x16   :  { %1424 = shalt.err (!%p1421_p7)
}
  0x17   :  { %s1614_s0 = smov 64   ;;  %s1615_s17 = smov 4  }
  0x18   :  { %57 = dma.hbm_to_vmem [thread:$0]  %s1899_s4, 2048, %s52_s22, [#allocation6], %s1614_s0, %s1614_s0, %s1615_s17  }
  0x19   :  { %s1616_s20 = smov [#allocation8]   ;;  %s1617_s23 = smov [#allocation2]  }
  0x1a   :  { %s73_s21 = sshll.u32 %s1616_s20, 4  ;;  %s37_s24 = sshll.u32 %s1617_s23, 4  ;;  %s74_s21 = int_to_ptr.vmem [resolvable:$true] %s73_s21  ;;  %s38_s24 = int_to_ptr.vmem [resolvable:$true] %s37_s24 }
  0x1b   :  { %s1425_s27 = scalar_lea.hbm %s1901_s6, 2048 }
  0x1c   :  { %p1426_p8 = scmp.ne.s32.totalorder %s1901_s6, %s1425_s27  ;;  %p1429_p9 = scmp.lt.u32.totalorder %s1425_s27, %s1901_s6 }
  0x1e   :  { %p1431_p10 = pnand %p1429_p9, %p1426_p8 }
  0x20   :  { %1434 = shalt.err (!%p1431_p10)
}
  0x21   :  { %s1435_s4 = scalar_lea.vmem %s74_s21, 2048  ;;  %p1440_p12 = scmp.lt.s32.totalorder %s74_s21, %s74_s21 }
  0x22   :  { %p1436_p11 = scmp.ne.s32.totalorder %s74_s21, %s1435_s4  ;;  %p1441_p13 = scmp.lt.s32.totalorder %s1435_s4, %s1435_s4 }
  0x24   :  { %p1442_p0 = por %p1441_p13, %p1440_p12 }
  0x26   :  { %p1443_p1 = pnand %p1442_p0, %p1436_p11 }
  0x28   :  { %1446 = shalt.err (!%p1443_p1)
}
  0x29   :  { %s1618_s22 = smov 128   ;;  %s1619_s18 = smov 8  }
  0x2a   :  { %79 = dma.hbm_to_vmem [thread:$0]  %s1901_s6, 2048, %s74_s21, [#allocation9], %s1618_s22, %s1618_s22, %s1619_s18  }
  0x2b   :  { %s1447_s25 = scalar_lea.hbm %s1897_s2, 2048 }
  0x2c   :  { %p1448_p2 = scmp.ne.s32.totalorder %s1897_s2, %s1447_s25  ;;  %p1451_p3 = scmp.lt.u32.totalorder %s1447_s25, %s1897_s2 }
  0x2e   :  { %p1453_p4 = pnand %p1451_p3, %p1448_p2 }
  0x30   :  { %1456 = shalt.err (!%p1453_p4)
}
  0x31   :  { %s1457_s30 = scalar_lea.vmem %s38_s24, 2048  ;;  %p1462_p6 = scmp.lt.s32.totalorder %s38_s24, %s38_s24 }
  0x32   :  { %p1458_p5 = scmp.ne.s32.totalorder %s38_s24, %s1457_s30  ;;  %p1463_p7 = scmp.lt.s32.totalorder %s1457_s30, %s1457_s30 }
  0x34   :  { %p1464_p8 = por %p1463_p7, %p1462_p6 }
  0x36   :  { %p1465_p9 = pnand %p1464_p8, %p1458_p5 }
  0x38   :  { %1468 = shalt.err (!%p1465_p9)
}
  0x39   :  { %43 = dma.hbm_to_vmem [thread:$0]  %s1897_s2, 2048, %s38_s24, [#allocation3], %s1618_s22, %s1618_s22, %s1619_s18  }
  0x3a   :  { %s1620_s4 = smov [#allocation7]   ;;  %s1621_s20 = smov [#allocation10]  }
  0x3b   :  { %s64_s19 = sshll.u32 %s1620_s4, 4  ;;  %s91_s14 = sshll.u32 %s1621_s20, 4  ;;  %s65_s19 = int_to_ptr.vmem [resolvable:$true] %s64_s19  ;;  %s92_s14 = int_to_ptr.vmem [resolvable:$true] %s91_s14 }
  0x3c   :  { %s1469_s26 = scalar_lea.hbm %s1900_s5, 16 }
  0x3d   :  { %p1470_p10 = scmp.ne.s32.totalorder %s1900_s5, %s1469_s26  ;;  %p1473_p11 = scmp.lt.u32.totalorder %s1469_s26, %s1900_s5 }
  0x3f   :  { %p1475_p12 = pnand %p1473_p11, %p1470_p10 }
  0x41   :  { %1478 = shalt.err (!%p1475_p12)
}
  0x42   :  { %s1479_s2 = scalar_lea.vmem %s65_s19, 16  ;;  %s1483_s24 = scalar_lea.vmem %s65_s19, 32 }
  0x43   :  { %p1480_p13 = scmp.ne.s32.totalorder %s65_s19, %s1479_s2  ;;  %p1484_p0 = scmp.lt.s32.totalorder %s65_s19, %s65_s19 }
  0x44   :  { %p1485_p1 = scmp.lt.s32.totalorder %s1483_s24, %s1479_s2 }
  0x46   :  { %p1486_p2 = por %p1485_p1, %p1484_p0 }
  0x48   :  { %p1487_p3 = pnand %p1486_p2, %p1480_p13 }
  0x4a   :  { %1490 = shalt.err (!%p1487_p3)
}
  0x4b   :  { %67 = dma.hbm_to_vmem [thread:$0]  %s1900_s5, 16, %s65_s19, [#allocation6]  }
  0x4c   :  { %s1491_s23 = scalar_lea.hbm %s1905_s10, 2048 }
  0x4d   :  { %p1492_p4 = scmp.ne.s32.totalorder %s1905_s10, %s1491_s23  ;;  %p1495_p5 = scmp.lt.u32.totalorder %s1491_s23, %s1905_s10 }
  0x4f   :  { %p1497_p6 = pnand %p1495_p5, %p1492_p4 }
  0x51   :  { %1500 = shalt.err (!%p1497_p6)
}
  0x52   :  { %s1501_s29 = scalar_lea.vmem %s92_s14, 2048  ;;  %p1506_p8 = scmp.lt.s32.totalorder %s92_s14, %s92_s14 }
  0x53   :  { %p1502_p7 = scmp.ne.s32.totalorder %s92_s14, %s1501_s29  ;;  %p1507_p9 = scmp.lt.s32.totalorder %s1501_s29, %s1501_s29 }
  0x55   :  { %p1508_p10 = por %p1507_p9, %p1506_p8 }
  0x57   :  { %p1509_p11 = pnand %p1508_p10, %p1502_p7 }
  0x59   :  { %1512 = shalt.err (!%p1509_p11)
}
  0x5a   :  { %97 = dma.hbm_to_vmem [thread:$0]  %s1905_s10, 2048, %s92_s14, [#allocation9], %s1618_s22, %s1618_s22, %s1619_s18  }
  0x5b   :  { %s1622_s30 = smov [#allocation11]   ;;  %s1513_s21 = scalar_lea.hbm %s1907_s12, 2048 }
  0x5c   :  { %s105_s2 = sshll.u32 %s1622_s30, 4  ;;  %p1514_p12 = scmp.ne.s32.totalorder %s1907_s12, %s1513_s21  ;;  %s106_s2 = int_to_ptr.vmem [resolvable:$true] %s105_s2 }
  0x5d   :  { %p1517_p13 = scmp.lt.u32.totalorder %s1513_s21, %s1907_s12 }
  0x5f   :  { %p1519_p0 = pnand %p1517_p13, %p1514_p12 }
  0x61   :  { %1522 = shalt.err (!%p1519_p0)
}
  0x62   :  { %s1523_s26 = scalar_lea.vmem %s106_s2, 2048  ;;  %p1528_p2 = scmp.lt.s32.totalorder %s106_s2, %s106_s2 }
  0x63   :  { %p1524_p1 = scmp.ne.s32.totalorder %s106_s2, %s1523_s26  ;;  %p1529_p3 = scmp.lt.s32.totalorder %s1523_s26, %s1523_s26 }
  0x65   :  { %p1530_p4 = por %p1529_p3, %p1528_p2 }
  0x67   :  { %p1531_p5 = pnand %p1530_p4, %p1524_p1 }
  0x69   :  { %1534 = shalt.err (!%p1531_p5)
}
  0x6a   :  { %111 = dma.hbm_to_vmem [thread:$0]  %s1907_s12, 2048, %s106_s2, [#allocation12], %s1614_s0, %s1614_s0, %s1615_s17  }
  0x6b   :  { %1601 = dma.done.wait [#allocation3], 2048  }
  0x6c   :  { %1602 = vsyncadd [#allocation3], 4294965248 }
  0x6d   :  { %1603 = dma.done.wait [#allocation6], 2064  }
  0x6e   :  { %1604 = vsyncadd [#allocation6], 4294965232 }
  0x6f   :  { %1605 = dma.done.wait [#allocation9], 4096  }
  0x70   :  { %1606 = vsyncadd [#allocation9], 4294963200 }
  0x71   :  { %1607 = dma.done.wait [#allocation12], 2048  }
  0x72   :  { %1608 = vsyncadd [#allocation12], 4294965248  ;;  %v1623_v0 = vmov 0   ;;  %v1289_v1 = vld [vmem:[#allocation2 + $0x4] ss:$8 sps:$4 sm:$0xff]   ;;  %v1317_v15 = vld [vmem:[#allocation5 + $0x50] sm:$0xff]   ;;  %v152_v46 = vlaneseq }
  0x73   :  { %274 = vmatprep.mubr.bf16.mxu0 %v1623_v0  ;;  %v1291_v2 = vld [vmem:[#allocation2] ss:$8 sps:$4 sm:$0xff]   ;;  %242 = vmatprep.subr.bf16.mxu0 %v1289_v1  ;;  %v1292_v3 = vld [vmem:[#allocation2 + $0x14] ss:$8 sps:$4 sm:$0xff]   ;;  %v1294_v4 = vld [vmem:[#allocation2 + $0x10] ss:$8 sps:$4 sm:$0xff]  }
  0x74   :  { %243 = vmatpush1.bf16.msra.mxu0 %v1291_v2  ;;  %v1295_v5 = vld [vmem:[#allocation2 + $0x24] ss:$8 sps:$4 sm:$0xff]   ;;  %v1297_v6 = vld [vmem:[#allocation2 + $0x20] ss:$8 sps:$4 sm:$0xff]   ;;  %v1298_v7 = vld [vmem:[#allocation2 + $0x34] ss:$8 sps:$4 sm:$0xff]  }
  0x75   :  { %244 = vmatprep.subr.bf16.mxu0 %v1292_v3  ;;  %v1300_v8 = vld [vmem:[#allocation2 + $0x30] ss:$8 sps:$4 sm:$0xff]   ;;  %v1301_v9 = vld [vmem:[#allocation2 + $0x44] ss:$8 sps:$4 sm:$0xff]   ;;  %v1303_v12 = vld [vmem:[#allocation2 + $0x40] ss:$8 sps:$4 sm:$0xff]  }
  0x76   :  { %v1313_v10 = vld [vmem:[#allocation5 + $0x40] sm:$0xff]   ;;  %v1315_v13 = vld [vmem:[#allocation5 + $0x48] sm:$0xff]   ;;  %v1304_v16 = vld [vmem:[#allocation2 + $0x54] ss:$8 sps:$4 sm:$0xff]   ;;  %s1915_s17 = sld [smem:[#allocation23_spill]]  ;;  %v153_v47 = vshrl.u32 %v152_v46, 7 }
  0x77   :  { %v1314_v11 = vld [vmem:[#allocation5] sm:$0xff]   ;;  %1200 = vmatprep.subr.bf16.mxu1 %v1313_v10  ;;  %v1316_v14 = vld [vmem:[#allocation5 + $0x8] sm:$0xff]   ;;  %v1306_v17 = vld [vmem:[#allocation2 + $0x50] ss:$8 sps:$4 sm:$0xff]   ;;  %vm1625_vm0 = vmmov 0  }
  0x78   :  { %245 = vmatpush1.bf16.msra.mxu0 %v1294_v4  ;;  %1201 = vmatpush3.bf16.msra.mxu1 %v1314_v11  ;;  %v1318_v18 = vld [vmem:[#allocation5 + $0x10] sm:$0xff]   ;;  %v1319_v19 = vld [vmem:[#allocation5 + $0x58] sm:$0xff]   ;;  %v1307_v20 = vld [vmem:[#allocation2 + $0x64] ss:$8 sps:$4 sm:$0xff]   ;;  %v1806_v48 = vsub.s32 0, %v153_v47  ;;  %v1811_v50 = vsub.s32 1, %v153_v47 }
  0x79   :  { %246 = vmatprep.subr.bf16.mxu0 %v1295_v5  ;;  %1202 = vmatprep.subr.bf16.mxu1 %v1315_v13  ;;  %v1309_v21 = vld [vmem:[#allocation2 + $0x60] ss:$8 sps:$4 sm:$0xff]   ;;  %v1310_v22 = vld [vmem:[#allocation2 + $0x74] ss:$8 sps:$4 sm:$0xff]   ;;  %v1312_v26 = vld [vmem:[#allocation2 + $0x70] ss:$8 sps:$4 sm:$0xff]  }
  0x7a   :  { %v1320_v23 = vld [vmem:[#allocation5 + $0x18] sm:$0xff]   ;;  %v1321_v24 = vld [vmem:[#allocation5 + $0x60] sm:$0xff]   ;;  %v1323_v27 = vld [vmem:[#allocation5 + $0x68] sm:$0xff]   ;;  %v1624_v5 = vmov 0.0  }
  0x7b   :  { %v1322_v25 = vld [vmem:[#allocation5 + $0x20] sm:$0xff]   ;;  %v1324_v28 = vld [vmem:[#allocation5 + $0x28] sm:$0xff]   ;;  %v1325_v30 = vld [vmem:[#allocation5 + $0x70] sm:$0xff]  }
  0x7c   :  { %247 = vmatpush1.bf16.msra.mxu0 %v1297_v6  ;;  %1203 = vmatpush3.bf16.msra.mxu1 %v1316_v14  ;;  %v133_v29 = vld [vmem:[%s1915_s17] sm:$0xf]  ;;  %v1326_v31 = vld [vmem:[#allocation5 + $0x30] sm:$0xff]   ;;  %v1327_v32 = vld [vmem:[#allocation5 + $0x78] sm:$0xff]  }
  0x7d   :  { %248 = vmatprep.subr.bf16.mxu0 %v1298_v7  ;;  %1204 = vmatprep.subr.bf16.mxu1 %v1317_v15  ;;  %v1328_v33 = vld [vmem:[#allocation5 + $0x38] sm:$0xff]   ;;  %v1329_v34 = vld [vmem:[#allocation8] ss:$8 sps:$4 sm:$0xff]   ;;  %v1331_v35 = vld [vmem:[#allocation8 + $0x4] ss:$8 sps:$4 sm:$0xff]  }
  0x7e   :  { %v1334_v36 = vld [vmem:[#allocation8 + $0x14] ss:$8 sps:$4 sm:$0xff]   ;;  %v1332_v37 = vld [vmem:[#allocation8 + $0x10] ss:$8 sps:$4 sm:$0xff]   ;;  %v1337_v38 = vld [vmem:[#allocation8 + $0x24] ss:$8 sps:$4 sm:$0xff]  }
  0x7f   :  { %v1335_v39 = vld [vmem:[#allocation8 + $0x20] ss:$8 sps:$4 sm:$0xff]   ;;  %v1340_v40 = vld [vmem:[#allocation8 + $0x34] ss:$8 sps:$4 sm:$0xff]   ;;  %v1338_v41 = vld [vmem:[#allocation8 + $0x30] ss:$8 sps:$4 sm:$0xff]  }
  0x80   :  { %249 = vmatpush1.bf16.msra.mxu0 %v1300_v8  ;;  %1205 = vmatpush3.bf16.msra.mxu1 %v1318_v18  ;;  %v1343_v42 = vld [vmem:[#allocation8 + $0x44] ss:$8 sps:$4 sm:$0xff]   ;;  %v1341_v43 = vld [vmem:[#allocation8 + $0x40] ss:$8 sps:$4 sm:$0xff]   ;;  %v1346_v44 = vld [vmem:[#allocation8 + $0x54] ss:$8 sps:$4 sm:$0xff]  }
  0x81   :  { %250 = vmatprep.subr.bf16.mxu0 %v1301_v9  ;;  %1206 = vmatprep.subr.bf16.mxu1 %v1319_v19  ;;  %v1344_v45 = vld [vmem:[#allocation8 + $0x50] ss:$8 sps:$4 sm:$0xff]   ;;  %v150_v49 = vld [vmem:[%s1898_s3] sm:$0x3]  ;;  %v1349_v63 = vld [vmem:[#allocation8 + $0x64] ss:$8 sps:$4 sm:$0xff]  }
  0x82   :  { %v155_v51 = vrot.slane %v150_v49, %v1806_v48  ;;  %v159_v52 = vrot.slane %v150_v49, %v1811_v50  ;;  %v1347_v1 = vld [vmem:[#allocation8 + $0x60] ss:$8 sps:$4 sm:$0xff]   ;;  %v1352_v2 = vld [vmem:[#allocation8 + $0x74] ss:$8 sps:$4 sm:$0xff]   ;;  %v1350_v3 = vld [vmem:[#allocation8 + $0x70] ss:$8 sps:$4 sm:$0xff]  }
  0x83   :  { %v1353_v4 = vld [vmem:[%s1903_s8] sm:$0xff]   ;;  %v1354_v6 = vld [vmem:[%s1903_s8 + $0x8] sm:$0xff]   ;;  %v1359_v19 = vld [vmem:[%s1903_s8 + $0x30] sm:$0xff]  }
  0x84   :  { %251 = vmatpush1.bf16.msra.mxu0 %v1303_v12  ;;  %1207 = vmatpush3.bf16.msra.mxu1 %v1320_v23  ;;  %v1125_v8 = vld [vmem:[#allocation7] ss:$0 sm:$0xff] }
  0x85   :  { %252 = vmatprep.subr.bf16.mxu0 %v1304_v16  ;;  %1208 = vmatprep.subr.bf16.mxu1 %v1321_v24  ;;  %v1355_v16 = vld [vmem:[%s1903_s8 + $0x10] sm:$0xff]   ;;  %v1357_v18 = vld [vmem:[%s1903_s8 + $0x20] sm:$0xff]  }
  0x86   :  { %v1366_v23 = vld [vmem:[#allocation10 + $0x14] ss:$8 sps:$4 sm:$0xff]   ;;  %v1364_v24 = vld [vmem:[#allocation10 + $0x10] ss:$8 sps:$4 sm:$0xff]  }
  0x87   :  { %v613_v46 = vld [vmem:[%s1896_s1] sm:$0xff] }
  0x88   :  { %253 = vmatpush1.bf16.msra.mxu0 %v1306_v17  ;;  %1209 = vmatpush3.bf16.msra.mxu1 %v1322_v25  ;;  %v1356_v17 = vld [vmem:[%s1903_s8 + $0x18] sm:$0xff]   ;;  %v1369_v25 = vld [vmem:[#allocation10 + $0x24] ss:$8 sps:$4 sm:$0xff]  }
  0x89   :  { %254 = vmatprep.subr.bf16.mxu0 %v1307_v20  ;;  %1210 = vmatprep.subr.bf16.mxu1 %v1323_v27  ;;  %v1360_v20 = vld [vmem:[%s1903_s8 + $0x38] sm:$0xff]  }
  0x8a   :  { %v1372_v27 = vld [vmem:[#allocation10 + $0x34] ss:$8 sps:$4 sm:$0xff]  }
  0x8c   :  { %255 = vmatpush1.bf16.msra.mxu0 %v1309_v21  ;;  %1211 = vmatpush3.bf16.msra.mxu1 %v1324_v28  ;;  %v1361_v21 = vld [vmem:[#allocation10] ss:$8 sps:$4 sm:$0xff]   ;;  %v1370_v28 = vld [vmem:[#allocation10 + $0x30] ss:$8 sps:$4 sm:$0xff]  }
  0x8d   :  { %256 = vmatprep.subr.bf16.mxu0 %v1310_v22  ;;  %1212 = vmatprep.subr.bf16.mxu1 %v1325_v30  ;;  %v1363_v22 = vld [vmem:[#allocation10 + $0x4] ss:$8 sps:$4 sm:$0xff]   ;;  %v1373_v30 = vld [vmem:[#allocation10 + $0x40] ss:$8 sps:$4 sm:$0xff]  }
  0x90   :  { %257 = vmatpush1.bf16.msra.mxu0 %v1312_v26  ;;  %1213 = vmatpush3.bf16.msra.mxu1 %v1326_v31  ;;  %v1367_v26 = vld [vmem:[#allocation10 + $0x20] ss:$8 sps:$4 sm:$0xff]   ;;  %v1378_v31 = vld [vmem:[#allocation10 + $0x54] ss:$8 sps:$4 sm:$0xff]  }
  0x91   :  { %1214 = vmatprep.subr.bf16.mxu1 %v1327_v32  ;;  %572 = vmatprep.subr.bf16.mxu0 %v1331_v35  ;;  %v1376_v32 = vld [vmem:[#allocation10 + $0x50] ss:$8 sps:$4 sm:$0xff]   ;;  %v480_v35 = vld [vmem:[%s1902_s7] sm:$0x3] }
  0x93   :  { %275 = vmatmul.mubr.bf16.vlgmr.msra.gmra.mrb[0].mxu0 %v133_v29  ;;  %v1375_v29 = vld [vmem:[#allocation10 + $0x44] ss:$8 sps:$4 sm:$0xff]  }
  0x94   :  { %604 = vmatprep.mubr.bf16.mxu0 %v1623_v0  ;;  %1215 = vmatpush3.bf16.msra.mxu1 %v1328_v33  ;;  %v1381_v33 = vld [vmem:[#allocation10 + $0x64] ss:$8 sps:$4 sm:$0xff]  }
  0x95   :  { %573 = vmatpush1.bf16.msra.mxu0 %v1329_v34  ;;  %1253 = vmatprep.subr.bf16.mxu1 %v1624_v5  ;;  %v1379_v34 = vld [vmem:[#allocation10 + $0x60] ss:$8 sps:$4 sm:$0xff]  }
  0x96   :  { %574 = vmatprep.subr.bf16.mxu0 %v1334_v36  ;;  %v485_v36 = vrot.slane %v480_v35, %v1806_v48 }
  0x99   :  { %575 = vmatpush1.bf16.msra.mxu0 %v1332_v37  ;;  %v489_v37 = vrot.slane %v480_v35, %v1811_v50 }
  0x9a   :  { %576 = vmatprep.subr.bf16.mxu0 %v1337_v38 }
  0x9d   :  { %577 = vmatpush1.bf16.msra.mxu0 %v1335_v39 }
  0x9e   :  { %578 = vmatprep.subr.bf16.mxu0 %v1340_v40 }
  0xa1   :  { %579 = vmatpush1.bf16.msra.mxu0 %v1338_v41 }
  0xa2   :  { %580 = vmatprep.subr.bf16.mxu0 %v1343_v42 }
  0xa5   :  { %581 = vmatpush1.bf16.msra.mxu0 %v1341_v43 }
  0xa6   :  { %582 = vmatprep.subr.bf16.mxu0 %v1346_v44 }
  0xa9   :  { %583 = vmatpush1.bf16.msra.mxu0 %v1344_v45 }
  0xaa   :  { %584 = vmatprep.subr.bf16.mxu0 %v1349_v63  ;;  %v1393_v63 = vld [vmem:[#allocation11 + $0x60] sm:$0xff]  }
  0xad   :  { %585 = vmatpush1.bf16.msra.mxu0 %v1347_v1  ;;  %v1394_v1 = vld [vmem:[#allocation11 + $0x20] sm:$0xff]  }
  0xae   :  { %586 = vmatprep.subr.bf16.mxu0 %v1352_v2  ;;  %v1395_v2 = vld [vmem:[#allocation11 + $0x68] sm:$0xff]  }
  0xb1   :  { %587 = vmatpush1.bf16.msra.mxu0 %v1350_v3  ;;  %v1396_v3 = vld [vmem:[#allocation11 + $0x28] sm:$0xff]  }
  0xb2   :  { %841 = vmatprep.subr.bf16.mxu0 %v1363_v22 }
 0x166   :  { %v276_v53 = vpop.f32.mrb[0].mxu0 }
 0x167   :  { %v277_v54 = vadd.f32 %v276_v53, %v155_v51  ;;  %v278_v55 = vpop.f32.mrb[1].mxu0  ;;  %v1384_v53 = vld [vmem:[#allocation10 + $0x74] ss:$8 sps:$4 sm:$0xff]  }
 0x168   :  { %v279_v56 = vadd.f32 %v278_v55, %v159_v52  ;;  %v280_v57 = vpop.f32.mrb[2].mxu0  ;;  %v1385_v55 = vld [vmem:[#allocation11 + $0x40] sm:$0xff]  }
 0x169   :  { %v283_v58 = vmax.f32 %v277_v54, 0.0  ;;  %v281_v59 = vpop.f32.mrb[3].mxu0  ;;  %v1382_v54 = vld [vmem:[#allocation10 + $0x70] ss:$8 sps:$4 sm:$0xff]   ;;  %v1387_v57 = vld [vmem:[#allocation11 + $0x48] sm:$0xff]  }
 0x16a   :  { %v284_v60 = vmax.f32 %v279_v56, 0.0  ;;  %v1386_v56 = vld [vmem:[#allocation11] sm:$0xff]   ;;  %v1389_v59 = vld [vmem:[#allocation11 + $0x50] sm:$0xff]  }
 0x16b   :  { %v285_v62 = vpack.c.bf16 %v283_v58, %v283_v58  ;;  %v1388_v58 = vld [vmem:[#allocation11 + $0x8] sm:$0xff]  }
 0x16c   :  { %v286_v61 = vpack.c.bf16 %v284_v60, %v284_v60  ;;  %v1390_v60 = vld [vmem:[#allocation11 + $0x10] sm:$0xff]  }
 0x16e   :  { %454 = vmatprep.mubr.bf16.mxu1 %v286_v61  ;;  %v1391_v61 = vld [vmem:[#allocation11 + $0x58] sm:$0xff]  }
 0x16f   :  { %455 = vmatmul.mubr.bf16.vlgmr.msra.gmra.mrb[0].mxu1 %v285_v62  ;;  %v1392_v62 = vld [vmem:[#allocation11 + $0x18] sm:$0xff]  }
 0x170   :  { %1254 = vmatpush3.bf16.msra.mxu1 %v1353_v4  ;;  %1269 = vmatprep.mubr.msk.bf16.mxu1 %vm1625_vm0, %v1624_v5  ;;  %v1158_v4 = vld [vmem:[%s1904_s9] ss:$0 sm:$0xff]  ;;  %s1626_s9 = smov [#allocation14]  }
 0x171   :  { %1255 = vmatprep.subr.bf16.mxu1 %v1624_v5  ;;  %s1080_s18 = sshll.u32 %s1626_s9, 4  ;;  %s1081_s18 = int_to_ptr.vmem [resolvable:$true] %s1080_s18 }
 0x172   :  { %p1540_p7 = scmp.lt.s32.totalorder %s1081_s18, %s1081_s18 }
 0x174   :  { %1256 = vmatpush3.bf16.msra.mxu1 %v1354_v6 }
 0x175   :  { %1257 = vmatprep.subr.bf16.mxu1 %v1624_v5 }
 0x178   :  { %1258 = vmatpush3.bf16.msra.mxu1 %v1355_v16  ;;  %v749_v16 = vld [vmem:[%s1906_s11] sm:$0x3]  ;;  %s1535_s11 = scalar_lea.vmem %s1081_s18, 128 }
 0x179   :  { %1259 = vmatprep.subr.bf16.mxu1 %v1624_v5  ;;  %p1536_p6 = scmp.ne.s32.totalorder %s1081_s18, %s1535_s11  ;;  %p1541_p8 = scmp.lt.s32.totalorder %s1535_s11, %s1535_s11 }
 0x17b   :  { %p1542_p9 = por %p1541_p8, %p1540_p7 }
 0x17c   :  { %1260 = vmatpush3.bf16.msra.mxu1 %v1356_v17  ;;  %v754_v17 = vrot.slane %v749_v16, %v1806_v48 }
 0x17d   :  { %1261 = vmatprep.subr.bf16.mxu1 %v1624_v5  ;;  %p1543_p10 = pnand %p1542_p9, %p1536_p6 }
 0x180   :  { %1262 = vmatpush3.bf16.msra.mxu1 %v1357_v18  ;;  %v758_v18 = vrot.slane %v749_v16, %v1811_v50 }
 0x181   :  { %1263 = vmatprep.subr.bf16.mxu1 %v1624_v5 }
 0x242   :  { %v1216_v7 = vpop.f32.mrb[0].mxu1 }
 0x243   :  { %v1217_v9 = vpop.f32.mrb[1].mxu1 }
 0x244   :  { %v1218_v10 = vadd.f32 %v1217_v9, %v1216_v7  ;;  %v1219_v11 = vpop.f32.mrb[2].mxu1 }
 0x245   :  { %v1220_v12 = vpop.f32.mrb[3].mxu1 }
 0x246   :  { %v457_v13 = vadd.f32 %v1218_v10, %v1125_v8  ;;  %v1397_v12 = vld [vmem:[#allocation11 + $0x70] sm:$0xff]  }
 0x248   :  { %v462_v14 = vmax.f32 %v457_v13, 0.0  ;;  %v1398_v13 = vld [vmem:[#allocation11 + $0x30] sm:$0xff]  }
 0x24a   :  { %v463_v15 = vpack.c.bf16 %v462_v14, %v462_v14  ;;  %v1399_v14 = vld [vmem:[#allocation11 + $0x78] sm:$0xff]  }
 0x24c   :  { %605 = vmatmul.mubr.bf16.vlgmr.msra.gmra.mrb[4].mxu0 %v463_v15  ;;  %v1400_v15 = vld [vmem:[#allocation11 + $0x38] sm:$0xff]  }
 0x24d   :  { %873 = vmatprep.mubr.bf16.mxu0 %v1623_v0  ;;  %v1358_v0 = vld [vmem:[%s1903_s8 + $0x28] sm:$0xff]   ;;  %842 = vmatpush1.bf16.msra.mxu0 %v1361_v21 }
 0x24e   :  { %1264 = vmatpush3.bf16.msra.mxu1 %v1358_v0  ;;  %843 = vmatprep.subr.bf16.mxu0 %v1366_v23 }
 0x24f   :  { %1265 = vmatprep.subr.bf16.mxu1 %v1624_v5 }
 0x251   :  { %844 = vmatpush1.bf16.msra.mxu0 %v1364_v24 }
 0x252   :  { %1266 = vmatpush3.bf16.msra.mxu1 %v1359_v19  ;;  %845 = vmatprep.subr.bf16.mxu0 %v1369_v25 }
 0x253   :  { %1267 = vmatprep.subr.bf16.mxu1 %v1624_v5 }
 0x255   :  { %846 = vmatpush1.bf16.msra.mxu0 %v1367_v26 }
 0x256   :  { %1268 = vmatpush3.bf16.msra.mxu1 %v1360_v20  ;;  %847 = vmatprep.subr.bf16.mxu0 %v1372_v27 }
 0x257   :  { %1231 = vmatprep.subr.bf16.mxu1 %v1385_v55 }
 0x259   :  { %848 = vmatpush1.bf16.msra.mxu0 %v1370_v28 }
 0x25a   :  { %849 = vmatprep.subr.bf16.mxu0 %v1375_v29 }
 0x25d   :  { %850 = vmatpush1.bf16.msra.mxu0 %v1373_v30 }
 0x25e   :  { %851 = vmatprep.subr.bf16.mxu0 %v1378_v31 }
 0x261   :  { %852 = vmatpush1.bf16.msra.mxu0 %v1376_v32 }
 0x262   :  { %853 = vmatprep.subr.bf16.mxu0 %v1381_v33 }
 0x265   :  { %854 = vmatpush1.bf16.msra.mxu0 %v1379_v34 }
 0x266   :  { %855 = vmatprep.subr.bf16.mxu0 %v1384_v53 }
 0x269   :  { %856 = vmatpush1.bf16.msra.mxu0 %v1382_v54 }
 0x31f   :  { %v606_v38 = vpop.f32.mrb[4].mxu0 }
 0x320   :  { %v607_v39 = vadd.f32 %v606_v38, %v485_v36  ;;  %v608_v40 = vpop.f32.mrb[5].mxu0 }
 0x321   :  { %v609_v41 = vadd.f32 %v608_v40, %v489_v37  ;;  %v610_v42 = vpop.f32.mrb[6].mxu0 }
 0x322   :  { %1062 = vst [vmem:[#allocation14] sm:$0xff] %v607_v39  ;;  %v611_v43 = vpop.f32.mrb[7].mxu0 }
 0x323   :  { %v614_v44 = vmul.f32 0.5, %v609_v41  ;;  %1063 = vst [vmem:[#allocation16] sm:$0xff] %v609_v41 }
 0x325   :  { %v615_v45 = vmul.f32 1.442695, %v614_v44 }
 0x327   :  { %1401 = vpow2.f32 %v615_v45 }
 0x331   :  { %v1402_v47 = vpop.eup %1401 }
 0x332   :  { %v617_v49 = vmul.f32 %v1402_v47, %v613_v46 }
 0x334   :  { %v618_v51 = vadd.f32 %v617_v49, %v607_v39 }
 0x336   :  { %v619_v52 = vpack.c.bf16 %v618_v51, %v618_v51 }
 0x338   :  { %1270 = vmatmul.mubr.bf16.vlgmr.msra.gmra.mrb[4].mxu1 %v619_v52 }
 0x339   :  { %1232 = vmatpush3.bf16.msra.mxu1 %v1386_v56 }
 0x33a   :  { %1233 = vmatprep.subr.bf16.mxu1 %v1387_v57 }
 0x33d   :  { %1234 = vmatpush3.bf16.msra.mxu1 %v1388_v58 }
 0x33e   :  { %1235 = vmatprep.subr.bf16.mxu1 %v1389_v59 }
 0x341   :  { %1236 = vmatpush3.bf16.msra.mxu1 %v1390_v60 }
 0x342   :  { %1237 = vmatprep.subr.bf16.mxu1 %v1391_v61 }
 0x345   :  { %1238 = vmatpush3.bf16.msra.mxu1 %v1392_v62 }
 0x346   :  { %1239 = vmatprep.subr.bf16.mxu1 %v1393_v63 }
 0x349   :  { %1240 = vmatpush3.bf16.msra.mxu1 %v1394_v1 }
 0x34a   :  { %1241 = vmatprep.subr.bf16.mxu1 %v1395_v2 }
 0x34d   :  { %1242 = vmatpush3.bf16.msra.mxu1 %v1396_v3 }
 0x34e   :  { %1243 = vmatprep.subr.bf16.mxu1 %v1397_v12 }
 0x351   :  { %1244 = vmatpush3.bf16.msra.mxu1 %v1398_v13 }
 0x352   :  { %1245 = vmatprep.subr.bf16.mxu1 %v1399_v14 }
 0x355   :  { %1246 = vmatpush3.bf16.msra.mxu1 %v1400_v15 }
 0x40b   :  { %v725_v5 = vpop.f32.mrb[4].mxu1 }
 0x40c   :  { %v726_v6 = vadd.f32 %v1158_v4, %v725_v5  ;;  %v1271_v7 = vpop.f32.mrb[5].mxu1 }
 0x40d   :  { %v728_v8 = vpop.f32.mrb[6].mxu1 }
 0x40e   :  { %v731_v9 = vmax.f32 %v726_v6, 0.0  ;;  %v1272_v10 = vpop.f32.mrb[7].mxu1 }
 0x410   :  { %v732_v11 = vpack.c.bf16 %v731_v9, %v731_v9 }
 0x412   :  { %874 = vmatmul.mubr.bf16.vlgmr.msra.gmra.mrb[8].mxu0 %v732_v11 }
 0x4e5   :  { %v875_v0 = vpop.f32.mrb[8].mxu0 }
 0x4e6   :  { %v876_v19 = vadd.f32 %v875_v0, %v754_v17  ;;  %v877_v20 = vpop.f32.mrb[9].mxu0 }
 0x4e7   :  { %v878_v21 = vadd.f32 %v877_v20, %v758_v18  ;;  %v879_v22 = vpop.f32.mrb[10].mxu0 }
 0x4e8   :  { %v882_v23 = vmax.f32 %v876_v19, 0.0  ;;  %v880_v24 = vpop.f32.mrb[11].mxu0 }
 0x4e9   :  { %v883_v25 = vmax.f32 %v878_v21, 0.0 }
 0x4ea   :  { %v884_v27 = vpack.c.bf16 %v882_v23, %v882_v23 }
 0x4eb   :  { %v885_v26 = vpack.c.bf16 %v883_v25, %v883_v25 }
 0x4ed   :  { %1053 = vmatprep.mubr.bf16.mxu1 %v885_v26 }
 0x4ee   :  { %1054 = vmatmul.mubr.bf16.vlgmr.msra.gmra.mrb[8].mxu1 %v884_v27 }
 0x4ef   :  { %1546 = shalt.err (!%p1543_p10)
}
 0x4f0   :  { %s1547_s27 = scalar_lea.hbm %s1910_s15, 128 }
 0x4f1   :  { %p1548_p11 = scmp.ne.s32.totalorder %s1910_s15, %s1547_s27  ;;  %p1551_p12 = scmp.lt.u32.totalorder %s1547_s27, %s1910_s15 }
 0x4f3   :  { %p1553_p13 = pnand %p1551_p12, %p1548_p11 }
 0x4f5   :  { %1556 = shalt.err (!%p1553_p13)
}
 0x4f6   :  { %1083 = dma.vmem_to_hbm [thread:$0]  %s1081_s18, 128, %s1910_s15, [#allocation15]  }
 0x4f7   :  { %s1627_s24 = smov [#allocation16]  }
 0x4f8   :  { %s1090_s6 = sshll.u32 %s1627_s24, 4  ;;  %s1091_s6 = int_to_ptr.vmem [resolvable:$true] %s1090_s6 }
 0x4f9   :  { %s1557_s21 = scalar_lea.vmem %s1091_s6, 128  ;;  %p1562_p1 = scmp.lt.s32.totalorder %s1091_s6, %s1091_s6 }
 0x4fa   :  { %p1558_p0 = scmp.ne.s32.totalorder %s1091_s6, %s1557_s21  ;;  %p1563_p2 = scmp.lt.s32.totalorder %s1557_s21, %s1557_s21 }
 0x4fc   :  { %p1564_p3 = por %p1563_p2, %p1562_p1 }
 0x4fe   :  { %p1565_p4 = pnand %p1564_p3, %p1558_p0 }
 0x500   :  { %1568 = shalt.err (!%p1565_p4)
}
 0x501   :  { %s1569_s23 = scalar_lea.hbm %s1911_s16, 128 }
 0x502   :  { %p1570_p5 = scmp.ne.s32.totalorder %s1911_s16, %s1569_s23  ;;  %p1573_p6 = scmp.lt.u32.totalorder %s1569_s23, %s1911_s16 }
 0x504   :  { %p1575_p7 = pnand %p1573_p6, %p1570_p5 }
 0x506   :  { %1578 = shalt.err (!%p1575_p7)
}
 0x507   :  { %1093 = dma.vmem_to_hbm [thread:$0]  %s1091_s6, 128, %s1911_s16, [#allocation15]   ;;  %v1183_v50 = vld [vmem:[%s1908_s13] ss:$0 sm:$0xff] }
 0x508   :  { %s1628_s7 = smov [#allocation13]  }
 0x509   :  { %s1070_s0 = sshll.u32 %s1628_s7, 4  ;;  %s1071_s0 = int_to_ptr.vmem [resolvable:$true] %s1070_s0 }
 0x50a   :  { %s1579_s17 = scalar_lea.vmem %s1071_s0, 128  ;;  %p1584_p9 = scmp.lt.s32.totalorder %s1071_s0, %s1071_s0 }
 0x50b   :  { %p1580_p8 = scmp.ne.s32.totalorder %s1071_s0, %s1579_s17  ;;  %p1585_p10 = scmp.lt.s32.totalorder %s1579_s17, %s1579_s17 }
 0x50d   :  { %p1586_p11 = por %p1585_p10, %p1584_p9 }
 0x50f   :  { %p1587_p12 = pnand %p1586_p11, %p1580_p8 }
 0x5c1   :  { %v1247_v48 = vpop.f32.mrb[8].mxu1 }
 0x5c2   :  { %v1248_v28 = vpop.f32.mrb[9].mxu1 }
 0x5c3   :  { %v1249_v29 = vadd.f32 %v1248_v28, %v1247_v48  ;;  %v1250_v30 = vpop.f32.mrb[10].mxu1 }
 0x5c4   :  { %v1251_v31 = vpop.f32.mrb[11].mxu1 }
 0x5c5   :  { %v1056_v32 = vadd.f32 %v1249_v29, %v1183_v50 }
 0x5c7   :  { %1061 = vst [vmem:[#allocation13] sm:$0xff] %v1056_v32 }
 0x5c8   :  { %1590 = shalt.err (!%p1587_p12)
}
 0x5c9   :  { %s1916_s18 = sld [smem:[#allocation24_spill]] }
 0x5cf   :  { %s1591_s13 = scalar_lea.hbm %s1916_s18, 128 }
 0x5d0   :  { %p1592_p13 = scmp.ne.s32.totalorder %s1916_s18, %s1591_s13  ;;  %p1595_p0 = scmp.lt.u32.totalorder %s1591_s13, %s1916_s18 }
 0x5d2   :  { %p1597_p1 = pnand %p1595_p0, %p1592_p13 }
 0x5d4   :  { %1600 = shalt.err (!%p1597_p1)
}
 0x5d5   :  { %1073 = dma.vmem_to_hbm [thread:$0]  %s1071_s0, 128, %s1916_s18, [#allocation4]  }
 0x5d6   :  { %1609 = dma.done.wait [#allocation4], 128  }
 0x5d7   :  { %1610 = vsyncadd [#allocation4], 4294967168 }
 0x5d8   :  { %1611 = dma.done.wait [#allocation15], 256  }
 0x5d9   :  { %1612 = vsyncadd [#allocation15], 4294967040 }
 0x5da   :  { %1103 = vsyncpa [#allocation3], 1 }
 0x5db   :  { %1104 = vsyncpa [#allocation6], 1 }
 0x5dc   :  { %1105 = vsyncpa [#allocation9], 1 }
 0x5dd   :  { %1106 = vsyncpa [#allocation12], 1 }
 0x5de   :  { %1107 = vsyncpa [#allocation4], 1 }
 0x5df   :  { %1108 = vsyncpa [#allocation15], 1 }

</bundles_post_ra>
